<compile_context>
chip_gen: v5e
topology: v5e:2x2
jax: 0.10.0
libtpu: 0.0.40
codegen_flags: <defaults>
</compile_context>

<pallas_src>
from functools import partial

import jax
import jax.numpy as jnp
from jax.experimental import pallas as pl
from jax.experimental.pallas import tpu as pltpu


def _round_up(n, m):
    return ((n + m - 1) // m) * m


def actor_kernel(x_ref, w_ref, b_ref, o_ref):
    S = x_ref.shape[1]          # true state_dim (un-padded K of layer 1)
    NP = w_ref.shape[2]         # lane-dense width (>= hidden_dim, action_dim)

    # Single cast point: activations enter the MXU as bf16, accumulate in f32.
    xb = x_ref[...].astype(jnp.bfloat16)

    # Layer 1: Linear + ReLU.  Only the first S rows of the padded slab matter.
    h = jnp.dot(xb, w_ref[0, :S, :],
                preferred_element_type=jnp.float32) + b_ref[0:1, :]
    h = jnp.maximum(h, 0.0)

    # Layer 2: Linear + ReLU (padded columns stay exactly 0 through ReLU).
    h = jnp.dot(h.astype(jnp.bfloat16), w_ref[1, :NP, :],
                preferred_element_type=jnp.float32) + b_ref[1:2, :]
    h = jnp.maximum(h, 0.0)

    # Layer 3: Linear -> logits.  Padded logit columns are biased to -1e9.
    logits = jnp.dot(h.astype(jnp.bfloat16), w_ref[2, :NP, :],
                     preferred_element_type=jnp.float32) + b_ref[2:3, :]

    # Numerically stable softmax over the (padded) action axis.
    # exp(-1e9 - m) underflows to 0, so padded columns contribute nothing.
    m = jnp.max(logits, axis=-1, keepdims=True)
    e = jnp.exp(logits - m)
    denom = jnp.sum(e, axis=-1, keepdims=True)
    # Exact reciprocal: policy probs are often sampled / used in log-prob grads.
    o_ref[...] = (e * pl.reciprocal(denom, approx=False)).astype(o_ref.dtype)


def pack_params(params):
    """One-time parameter packing (call once, reuse across forward calls).

    Fuses w1/w2/w3 into one lane-dense bf16 slab (3, KP, NP) and b1/b2/b3 into
    one f32 operand (3, NP), where NP = round_up(max(H, A), 128).
    Padded logit columns get a -1e9 bias so softmax ignores them exactly.
    """
    w1, b1, w2, b2, w3, b3 = params
    S, H = w1.shape
    A = w3.shape[1]

    NP = _round_up(max(H, A), 128)       # lane-dense N for every layer
    KP = max(NP, _round_up(S, 8))        # slab K dim (>= S and >= NP)

    wslab = jnp.zeros((3, KP, NP), jnp.float32)
    wslab = wslab.at[0, :S, :H].set(w1)
    wslab = wslab.at[1, :H, :H].set(w2)
    wslab = wslab.at[2, :H, :A].set(w3)
    wslab = wslab.astype(jnp.bfloat16)   # halves weight DMA, native MXU rate

    bslab = jnp.zeros((3, NP), jnp.float32)
    bslab = bslab.at[0, :H].set(b1.reshape(-1))
    bslab = bslab.at[1, :H].set(b2.reshape(-1))
    bslab = bslab.at[2, :].set(-1e9)     # padded logit columns -> -1e9
    bslab = bslab.at[2, :A].set(b3.reshape(-1))

    return wslab, bslab


@partial(jax.jit, static_argnames=("action_dim", "block_b"))
def actor_forward(x, wslab, bslab, *, action_dim, block_b=512):
    """Forward pass.  block_b is the max batch tile (kept a multiple of 8;
    512 is a multiple of 128 for v5e's MXU cadence and tiny in VMEM here)."""
    B, S = x.shape
    NP = wslab.shape[2]

    # Batch tile: multiple of 8, as large as block_b allows, but capped so the
    # grid has >= 2 steps whenever the batch spans more than one minimal tile
    # (lets the "parallel" axis shard across v7x's two TensorCores).
    B8 = _round_up(B, 8)
    tb_cap = _round_up((B8 + 1) // 2, 8) if B8 > 8 else 8
    TB = max(8, min(block_b, tb_cap))
    B_pad = _round_up(B, TB)
    if B_pad != B:
        x = jnp.pad(x, ((0, B_pad - B), (0, 0)))

    grid = (B_pad // TB,)

    out = pl.pallas_call(
        actor_kernel,
        out_shape=jax.ShapeDtypeStruct((B_pad, NP), jnp.float32),
        grid=grid,
        in_specs=[
            pl.BlockSpec((TB, S), lambda i: (i, 0)),            # x: batch-tiled
            pl.BlockSpec(wslab.shape, lambda i: (0, 0, 0)),     # fused weights
            pl.BlockSpec(bslab.shape, lambda i: (0, 0)),        # fused biases
        ],
        out_specs=pl.BlockSpec((TB, NP), lambda i: (i, 0)),     # lane-dense out
        compiler_params=pltpu.CompilerParams(
            dimension_semantics=("parallel",)),
    )(x, wslab, bslab)

    return out[:B, :action_dim]


def init_params(key, state_dim, action_dim, hidden_dim):
    # Deterministic init mimicking nn.Linear's uniform(-1/sqrt(fan_in), ...).
    ks = jax.random.split(key, 6)

    def linear(kw, kb, fan_in, fan_out):
        bound = 1.0 / jnp.sqrt(fan_in)
        w = jax.random.uniform(kw, (fan_in, fan_out), jnp.float32, -bound, bound)
        b = jax.random.uniform(kb, (1, fan_out), jnp.float32, -bound, bound)
        return w, b

    w1, b1 = linear(ks[0], ks[1], state_dim, hidden_dim)
    w2, b2 = linear(ks[2], ks[3], hidden_dim, hidden_dim)
    w3, b3 = linear(ks[4], ks[5], hidden_dim, action_dim)
    return (w1, b1, w2, b2, w3, b3)


if __name__ == "__main__":
    state_dim, action_dim, hidden_dim = 16, 8, 64
    batch = 20  # deliberately not a multiple of 8: exercises padding + 2-step grid

    key = jax.random.PRNGKey(0)
    k_x, k_p = jax.random.split(key)
    x = jax.random.normal(k_x, (batch, state_dim), dtype=jnp.float32)
    params = init_params(k_p, state_dim, action_dim, hidden_dim)

    # One-time packing (hoisted out of the per-call path).
    wslab, bslab = pack_params(params)

    # Default tiling and a small-tile (longer grid) path.
    out = jax.block_until_ready(
        actor_forward(x, wslab, bslab, action_dim=action_dim))
    out_multi = jax.block_until_ready(
        actor_forward(x, wslab, bslab, action_dim=action_dim, block_b=8))

    # Reference in plain f32 JAX (kernel matmuls use bf16 inputs / f32 accum ->
    # compare with relaxed tolerance).
    w1, b1, w2, b2, w3, b3 = params
    h = jnp.maximum(x @ w1 + b1, 0.0)
    h = jnp.maximum(h @ w2 + b2, 0.0)
    ref = jax.nn.softmax(h @ w3 + b3, axis=-1)

    for o in (out, out_multi):
        assert o.shape == (batch, action_dim)
        assert jnp.allclose(o, ref, atol=3e-2), "mismatch vs f32 reference"
        assert jnp.allclose(jnp.sum(o, axis=-1), 1.0, atol=1e-3), \
            "softmax rows must sum to ~1"
    assert jnp.allclose(out, out_multi, atol=1e-5), \
        "tile size must not change results"

    print("KERNEL_OK")
</pallas_src>

<mosaic_0001>
module attributes {stable_mosaic.version = 11 : i64} {
  func.func @actor_kernel(%arg0: i32, %arg1: memref<16x16xf32, #tpu.memory_space<vmem>>, %arg2: memref<3x128x128xbf16, #tpu.memory_space<vmem>>, %arg3: memref<3x128xf32, #tpu.memory_space<vmem>>, %arg4: memref<16x128xf32, #tpu.memory_space<vmem>>) attributes {dimension_semantics = [#tpu.dimension_semantics<parallel>], iteration_bounds = array<i64: 2>, scalar_prefetch = 0 : i64, scratch_operands = 0 : i64, tpu.core_type = #tpu.core_type<tc>, window_params = [{transform_indices = @transform_0, window_bounds = array<i64: 16, 16>}, {pipeline_mode = #tpu.pipeline_mode<synchronous>, transform_indices = @transform_1, window_bounds = array<i64: 3, 128, 128>}, {pipeline_mode = #tpu.pipeline_mode<synchronous>, transform_indices = @transform_2, window_bounds = array<i64: 3, 128>}, {transform_indices = @transform_3, window_bounds = array<i64: 16, 128>}]} {
    %c0 = arith.constant 0 : index
    %c0_0 = arith.constant 0 : index
    %0 = vector.load %arg1[%c0, %c0_0] : memref<16x16xf32, #tpu.memory_space<vmem>>, vector<16x16xf32>
    %1 = arith.truncf %0 : vector<16x16xf32> to vector<16x16xbf16>
    %c0_1 = arith.constant 0 : index
    %c0_2 = arith.constant 0 : index
    %c0_3 = arith.constant 0 : index
    %2 = vector.load %arg2[%c0_1, %c0_2, %c0_3] : memref<3x128x128xbf16, #tpu.memory_space<vmem>>, vector<1x16x128xbf16>
    %3 = vector.shape_cast %2 : vector<1x16x128xbf16> to vector<16x128xbf16>
    %cst = arith.constant dense<0.000000e+00> : vector<16x128xf32>
    %4 = tpu.matmul %1, %3, %cst {dimension_numbers = #tpu.dot_dimension_numbers<[1], [0], [0], [1], [0, 0, 1, 1], [], []>} : vector<16x16xbf16>, vector<16x128xbf16>, vector<16x128xf32> -> vector<16x128xf32>
    %c0_4 = arith.constant 0 : index
    %c0_5 = arith.constant 0 : index
    %5 = vector.load %arg3[%c0_4, %c0_5] : memref<3x128xf32, #tpu.memory_space<vmem>>, vector<1x128xf32>
    %6 = vector.broadcast %5 : vector<1x128xf32> to vector<16x128xf32>
    %7 = arith.addf %4, %6 : vector<16x128xf32>
    %cst_6 = arith.constant 0.000000e+00 : f32
    %8 = vector.broadcast %cst_6 : f32 to vector<16x128xf32>
    %9 = arith.maximumf %7, %8 : vector<16x128xf32>
    %10 = arith.truncf %9 : vector<16x128xf32> to vector<16x128xbf16>
    %c1 = arith.constant 1 : index
    %c0_7 = arith.constant 0 : index
    %c0_8 = arith.constant 0 : index
    %11 = vector.load %arg2[%c1, %c0_7, %c0_8] : memref<3x128x128xbf16, #tpu.memory_space<vmem>>, vector<1x128x128xbf16>
    %12 = vector.shape_cast %11 : vector<1x128x128xbf16> to vector<128x128xbf16>
    %cst_9 = arith.constant dense<0.000000e+00> : vector<16x128xf32>
    %13 = tpu.matmul %10, %12, %cst_9 {dimension_numbers = #tpu.dot_dimension_numbers<[1], [0], [0], [1], [0, 0, 1, 1], [], []>} : vector<16x128xbf16>, vector<128x128xbf16>, vector<16x128xf32> -> vector<16x128xf32>
    %c1_10 = arith.constant 1 : index
    %c0_11 = arith.constant 0 : index
    %14 = vector.load %arg3[%c1_10, %c0_11] : memref<3x128xf32, #tpu.memory_space<vmem>>, vector<1x128xf32>
    %15 = vector.broadcast %14 : vector<1x128xf32> to vector<16x128xf32>
    %16 = arith.addf %13, %15 : vector<16x128xf32>
    %cst_12 = arith.constant 0.000000e+00 : f32
    %17 = vector.broadcast %cst_12 : f32 to vector<16x128xf32>
    %18 = arith.maximumf %16, %17 : vector<16x128xf32>
    %19 = arith.truncf %18 : vector<16x128xf32> to vector<16x128xbf16>
    %c2 = arith.constant 2 : index
    %c0_13 = arith.constant 0 : index
    %c0_14 = arith.constant 0 : index
    %20 = vector.load %arg2[%c2, %c0_13, %c0_14] : memref<3x128x128xbf16, #tpu.memory_space<vmem>>, vector<1x128x128xbf16>
    %21 = vector.shape_cast %20 : vector<1x128x128xbf16> to vector<128x128xbf16>
    %cst_15 = arith.constant dense<0.000000e+00> : vector<16x128xf32>
    %22 = tpu.matmul %19, %21, %cst_15 {dimension_numbers = #tpu.dot_dimension_numbers<[1], [0], [0], [1], [0, 0, 1, 1], [], []>} : vector<16x128xbf16>, vector<128x128xbf16>, vector<16x128xf32> -> vector<16x128xf32>
    %c2_16 = arith.constant 2 : index
    %c0_17 = arith.constant 0 : index
    %23 = vector.load %arg3[%c2_16, %c0_17] : memref<3x128xf32, #tpu.memory_space<vmem>>, vector<1x128xf32>
    %24 = vector.broadcast %23 : vector<1x128xf32> to vector<16x128xf32>
    %25 = arith.addf %22, %24 : vector<16x128xf32>
    %cst_18 = arith.constant dense<0xFF800000> : vector<16xf32>
    %26 = vector.multi_reduction <maximumf>, %25, %cst_18 [1] : vector<16x128xf32> to vector<16xf32>
    %27 = vector.shape_cast %26 : vector<16xf32> to vector<16x1xf32>
    %28 = vector.broadcast %27 : vector<16x1xf32> to vector<16x128xf32>
    %29 = arith.subf %25, %28 : vector<16x128xf32>
    %30 = math.exp %29 : vector<16x128xf32>
    %cst_19 = arith.constant dense<0.000000e+00> : vector<16xf32>
    %31 = vector.multi_reduction <add>, %30, %cst_19 [1] : vector<16x128xf32> to vector<16xf32>
    %32 = vector.shape_cast %31 : vector<16xf32> to vector<16x1xf32>
    %33 = tpu.reciprocal %32 : vector<16x1xf32> -> vector<16x1xf32>
    %34 = vector.broadcast %33 : vector<16x1xf32> to vector<16x128xf32>
    %35 = arith.mulf %30, %34 : vector<16x128xf32>
    %c0_20 = arith.constant 0 : index
    %c0_21 = arith.constant 0 : index
    %36 = vector.load %arg4[%c0_20, %c0_21] : memref<16x128xf32, #tpu.memory_space<vmem>>, vector<16x128xf32>
    tpu.vector_store %arg4[%c0_20, %c0_21], %35 {strides = array<i32>} : memref<16x128xf32, #tpu.memory_space<vmem>>, vector<16x128xf32>,
    return
  }
  func.func @transform_0(%arg0: i32) -> (i32, i32) {
    %c0_i32 = arith.constant 0 : i32
    %c0_i32_0 = arith.constant 0 : i32
    return %arg0, %c0_i32 : i32, i32
  }
  func.func @transform_1(%arg0: i32) -> (i32, i32, i32) {
    %c0_i32 = arith.constant 0 : i32
    %c0_i32_0 = arith.constant 0 : i32
    %c0_i32_1 = arith.constant 0 : i32
    %c0_i32_2 = arith.constant 0 : i32
    return %c0_i32, %c0_i32_0, %c0_i32_1 : i32, i32, i32
  }
  func.func @transform_2(%arg0: i32) -> (i32, i32) {
    %c0_i32 = arith.constant 0 : i32
    %c0_i32_0 = arith.constant 0 : i32
    %c0_i32_1 = arith.constant 0 : i32
    return %c0_i32, %c0_i32_0 : i32, i32
  }
  func.func @transform_3(%arg0: i32) -> (i32, i32) {
    %c0_i32 = arith.constant 0 : i32
    %c0_i32_0 = arith.constant 0 : i32
    return %arg0, %c0_i32 : i32, i32
  }
}

</mosaic_0001>

<bundles_post_ra>
// kernel: actor_forward.1
= control target key start
LH: loop header
LB: loop body
LE: loop exit
PB: predicated region body
PF: predicated region fallthrough
CT: control target
= control target key end

     0   :  { %8 = vsyncpa [#allocation3], 0  ;;  %s701_s12 = smov 0   ;;  %s737_s0 = inlined_call_operand.vmem [shape: f32[32,16], index: 0, kind: input, shape index: {}]   ;;  %s738_s1 = inlined_call_operand.hbm [shape: bf16[3,128,128], index: 1, kind: input, shape index: {}]   ;;  %s739_s2 = inlined_call_operand.vmem [shape: f32[3,128], index: 2, kind: input, shape index: {}]   ;;  %s740_s3 = inlined_call_operand.vmem [shape: f32[32,128], index: 3, kind: output, shape index: {}]  }
   0x1 LB: > { %s124_s15 = sshll.u32 %s738_s1, 4  ;;  %s505_s16 = sadd.s32 4294967295, %s676_s12   ;;  %s676_s12 = sphi %s701_s12, %s14_s12   ;;  %s125_s15 = int_to_ptr.hbm [resolvable:$true] %s124_s15 }
   0x2   : > { %p507_p0 = scmp.ge.s32.totalorder %s676_s12, 1  ;;  %p113_p1 = scmp.lt.s32.totalorder %s676_s12, 3 }
   0x3   : > { %p612_p2 = scmp.eq.s32.totalorder %s505_s16, 0  ;;  %s678_s17 = smov [#allocation2]  }
   0x4   : > { %p114_p3 = pnand %p507_p0, %p113_p1  ;;  %s126_s18 = sshll.u32 %s678_s17, 4  ;;  %s127_s18 = int_to_ptr.vmem [resolvable:$true] %s126_s18 }
   0x5   : > { %s679_s19 = smov 64   ;;  %s680_s20 = smov 4  }
   0x6   : > { %p608_p4 = pneg %p114_p3  ;;  %154 = sbr.rel (%p114_p3) target bundleno = 706 (0x2c2), region = 32 }
   0x8   : > { %p609_p5 = pnand %p612_p2, %p608_p4 }
   0xa   : > { %611 = dma.hbm_to_vmem [thread:$0]  (!%p609_p5), %s125_s15, 3072, %s127_s18, [#allocation3], %s679_s19, %s679_s19, %s680_s20  }
   0xb   : > { %671 = dma.done.wait (%p612_p2), [#allocation3], 3072  }
   0xc   : > { %673 = vsyncadd (%p612_p2), [#allocation3], 4294964224  ;;  %s512_s21 = sshll.u32 %s505_s16, 1  ;;  %v587_v0 = vld [vmem:[#allocation2] sm:$0xff]  ;;  %v595_v4 = vld [vmem:[#allocation2 + $0x78] sm:$0xff]  ;;  %vm205_vm0 = vcmask 130048  }
   0xd   : > { %p180_p6 = scmp.lt.s32.totalorder %s512_s21, 3  ;;  %216 = vmatpush.bf16.msra.mxu0 %v587_v0  ;;  %293 = vmatpush.bf16.msra.mxu1 %v595_v4  ;;  %v594_v5 = vld [vmem:[#allocation2 + $0x70] sm:$0xff]  ;;  %v593_v6 = vld [vmem:[#allocation2 + $0x68] sm:$0xff]  ;;  %v592_v7 = vld [vmem:[#allocation2 + $0x60] sm:$0xff] }
   0xe   : > { %v591_v8 = vld [vmem:[#allocation2 + $0x58] sm:$0xff]  ;;  %v590_v9 = vld [vmem:[#allocation2 + $0x50] sm:$0xff]  ;;  %v589_v10 = vld [vmem:[#allocation2 + $0x48] sm:$0xff] }
   0xf   : > { %s742_s21 = smov (!%p180_p6, %s512_s21), 3  ;;  %v588_v11 = vld [vmem:[#allocation2 + $0x40] sm:$0xff]  ;;  %v603_v12 = vld [vmem:[#allocation2 + $0xb8] sm:$0xff]  ;;  %v602_v13 = vld [vmem:[#allocation2 + $0xb0] sm:$0xff] }
  0x10   : > { %s513_s22 = sshll.u32 %s742_s21, 3  ;;  %377 = vmatpush.bf16.msra.mxu2 %v603_v12  ;;  %v601_v14 = vld [vmem:[#allocation2 + $0xa8] sm:$0xff]  ;;  %v600_v15 = vld [vmem:[#allocation2 + $0xa0] sm:$0xff]  ;;  %v599_v24 = vld [vmem:[#allocation2 + $0x98] sm:$0xff] }
  0x11   : > { %s183_s25 = scalar_lea.vmem %s737_s0, %s513_s22  ;;  %294 = vmatpush.bf16.msra.mxu1 %v594_v5  ;;  %v625_v17 = vld [vmem:[%s739_s2] ss:$0 sm:$0xff]  ;;  %v598_v25 = vld [vmem:[#allocation2 + $0x90] sm:$0xff]  ;;  %v597_v26 = vld [vmem:[#allocation2 + $0x88] sm:$0xff]  ;;  %s189_s7 = scalar_lea.vmem %s740_s3, %s513_s22 }
  0x12   : > { %v192_v1 = vld [vmem:[%s183_s25] sm:$0xff]  ;;  %v193_v2 = vld [vmem:[%s183_s25 + $0x8] sm:$0xff] }
  0x13   : > { %v194_v3 = vpack.c.bf16 %v193_v2, %v192_v1  ;;  %v596_v27 = vld [vmem:[#allocation2 + $0x80] sm:$0xff] }
  0x14   : > { %378 = vmatpush.bf16.msra.mxu2 %v602_v13  ;;  %v626_v29 = vld [vmem:[%s739_s2 + $0x1] ss:$0 sm:$0xff]  ;;  %v627_v36 = vld [vmem:[%s739_s2 + $0x2] ss:$0 sm:$0xff] }
  0x15   : > { %520 = vmatmul.msk.bf16.vlgmr.msra.gmra.mxu0 %vm205_vm0, %v194_v3  ;;  %295 = vmatpush.bf16.msra.mxu1 %v593_v6 }
  0x18   : > { %379 = vmatpush.bf16.msra.mxu2 %v601_v14 }
  0x19   : > { %296 = vmatpush.bf16.msra.mxu1 %v592_v7 }
  0x1c   : > { %380 = vmatpush.bf16.msra.mxu2 %v600_v15 }
  0x1d   : > { %297 = vmatpush.bf16.msra.mxu1 %v591_v8 }
  0x20   : > { %381 = vmatpush.bf16.msra.mxu2 %v599_v24 }
  0x21   : > { %298 = vmatpush.bf16.msra.mxu1 %v590_v9 }
  0x24   : > { %382 = vmatpush.bf16.msra.mxu2 %v598_v25 }
  0x25   : > { %299 = vmatpush.bf16.msra.mxu1 %v589_v10 }
  0x28   : > { %383 = vmatpush.bf16.msra.mxu2 %v597_v26 }
  0x29   : > { %300 = vmatpush.bf16.msra.mxu1 %v588_v11 }
  0x2c   : > { %384 = vmatpush.bf16.msra.mxu2 %v596_v27 }
  0x92   : > { %v218_v16 = vpop.f32.mrf.mxu0 }
  0x93   : > { %v219_v18 = vadd.f32 %v625_v17, %v218_v16 }
  0x95   : > { %v223_v21 = vmax.f32 %v219_v18, 0.0 }
  0x9a   : > { %v220_v19 = vpop.f32.mrf.mxu0 }
  0x9b   : > { %v221_v20 = vadd.f32 %v625_v17, %v220_v19 }
  0x9d   : > { %v224_v22 = vmax.f32 %v221_v20, 0.0 }
  0x9f   : > { %v225_v23 = vpack.c.bf16 %v224_v22, %v223_v21 }
  0xa1   : > { %301 = vmatmul.bf16.vlgmr.msra.gmra.mxu1 %v225_v23 }
 0x11e   : > { %v302_v28 = vpop.f32.mrf.mxu1 }
 0x11f   : > { %v303_v30 = vadd.f32 %v626_v29, %v302_v28 }
 0x121   : > { %v307_v33 = vmax.f32 %v303_v30, 0.0 }
 0x126   : > { %v304_v31 = vpop.f32.mrf.mxu1 }
 0x127   : > { %v305_v32 = vadd.f32 %v626_v29, %v304_v31 }
 0x129   : > { %v308_v34 = vmax.f32 %v305_v32, 0.0 }
 0x12b   : > { %v309_v35 = vpack.c.bf16 %v308_v34, %v307_v33 }
 0x12d   : > { %385 = vmatmul.bf16.vlgmr.msra.gmra.mxu2 %v309_v35 }
 0x1b0   : > { %v386_v37 = vpop.f32.mrf.mxu2 }
 0x1b1   : > { %v387_v38 = vadd.f32 %v627_v36, %v386_v37 }
 0x1b3   : > { %391 = vmax.xlane.f32.xlu0 %v387_v38 }
 0x1b8   : > { %v388_v39 = vpop.f32.mrf.mxu2 }
 0x1b9   : > { %v389_v40 = vadd.f32 %v627_v36, %v388_v39 }
 0x1bb   : > { %393 = vmax.xlane.f32.xlu0 %v389_v40 }
 0x226   : > { %v392_v41 = vpop.xlane.xlu0 %391 }
 0x227   : > { %v395_v42 = vsub.f32 %v387_v38, %v392_v41 }
 0x229   : > { %v397_v43 = vmul.f32 1.442695, %v395_v42 }
 0x22b   : > { %628 = vpow2.f32 %v397_v43 }
 0x22e   : > { %v394_v44 = vpop.xlane.xlu0 %393 }
 0x22f   : > { %v396_v45 = vsub.f32 %v389_v40, %v394_v44 }
 0x231   : > { %v629_v46 = vpop.eup %628  ;;  %v399_v47 = vmul.f32 1.442695, %v396_v45 }
 0x232   : > { %401 = vadd.xlane.f32.xlu1 %v629_v46 }
 0x233   : > { %630 = vpow2.f32 %v399_v47 }
 0x239   : > { %v631_v48 = vpop.eup %630 }
 0x23a   : > { %403 = vadd.xlane.f32.xlu1 %v631_v48 }
 0x2a5   : > { %v402_v49 = vpop.xlane.xlu1 %401 }
 0x2a6   : > { %632 = vrcp.f32 %v402_v49  ;;  %v416_v54 = vand.u32 2147483648, %v402_v49  ;;  %v414_v56 = vand.u32 2147483647, %v402_v49  ;;  %vm410_vm2 = vweird.f32 %v402_v49 }
 0x2a8   : > { %v417_v59 = vor.u32 1.1754944e-38, %v416_v54  ;;  %vm415_vm4 = vcmp.eq.f32.partialorder %v414_v56, 8.507059e+37 }
 0x2ac   : > { %v633_v50 = vpop.eup %632 }
 0x2ad   : > { %v406_v51 = vmul.f32 %v633_v50, %v402_v49  ;;  %v404_v52 = vpop.xlane.xlu1 %403  ;;  %vm411_vm1 = vweird.f32 %v633_v50 }
 0x2ae   : > { %634 = vrcp.f32 %v404_v52  ;;  %vm412_vm3 = vmor %vm410_vm2, %vm411_vm1  ;;  %v430_v1 = vand.u32 2147483648, %v404_v52  ;;  %v428_v3 = vand.u32 2147483647, %v404_v52  ;;  %vm424_vm6 = vweird.f32 %v404_v52 }
 0x2af   : > { %v407_v53 = vsub.f32 1.0, %v406_v51 }
 0x2b0   : > { %v431_v5 = vor.u32 1.1754944e-38, %v430_v1  ;;  %vm429_vm8 = vcmp.eq.f32.partialorder %v428_v3, 8.507059e+37 }
 0x2b1   : > { %v408_v55 = vmul.f32 %v633_v50, %v407_v53 }
 0x2b3   : > { %v409_v57 = vadd.f32 %v633_v50, %v408_v55 }
 0x2b4   : > { %v635_v58 = vpop.eup %634 }
 0x2b5   : > { %v413_v60 = vsel %vm412_vm3, %v633_v50, %v409_v57  ;;  %v420_v61 = vmul.f32 %v635_v58, %v404_v52  ;;  %vm425_vm5 = vweird.f32 %v635_v58 }
 0x2b6   : > { %v418_v62 = vsel %vm415_vm4, %v417_v59, %v413_v60  ;;  %vm426_vm7 = vmor %vm424_vm6, %vm425_vm5 }
 0x2b7   : > { %v433_v63 = vmul.f32 %v629_v46, %v418_v62  ;;  %v421_v0 = vsub.f32 1.0, %v420_v61 }
 0x2b9   : > { %435 = vst [vmem:[%s189_s7] sm:$0xff] %v433_v63  ;;  %v422_v2 = vmul.f32 %v635_v58, %v421_v0 }
 0x2bb   : > { %v423_v4 = vadd.f32 %v635_v58, %v422_v2 }
 0x2bd   : > { %v427_v6 = vsel %vm426_vm7, %v635_v58, %v423_v4 }
 0x2be   : > { %v432_v7 = vsel %vm429_vm8, %v431_v5, %v427_v6 }
 0x2bf   : > { %v434_v8 = vmul.f32 %v631_v48, %v432_v7 }
 0x2c1   : > { %436 = vst [vmem:[%s189_s7 + $0x8] sm:$0xff] %v434_v8 }
 0x2c2 PF: > { %s14_s12 = sadd.s32 1, %s676_s12  }
 0x2c3   : > { %p11_p7 = scmp.ge.s32.totalorder %s14_s12, 4  }
 0x2c5   :  { %13 = sbr.rel (!%p11_p7) target bundleno = 1 (0x1), region = 69 }
 0x2ca   :  { %459 = vsyncpa [#allocation3], 1 }
 0x2cb   :  { %461 = vsyncpa [#allocation3 + $0x1], 1 }

</bundles_post_ra>
